<compile_context>
chip_gen: v7x
topology: tpu7x:2x2x1
jax: 0.10.0
libtpu: 0.0.40
codegen_flags: <defaults>
</compile_context>

<pallas_src>
import jax
import jax.numpy as jnp
from jax.experimental import pallas as pl
from jax.experimental.pallas import tpu as pltpu


def _split_linear_kernel(x_ref, w_ref, b_ref, o_ref):
    # x_ref: (tm, size)   bf16 row tile (interleaved h1/h2 rows of the input)
    # w_ref: (size, tn)   bf16 weight (stripe), VMEM-resident across row tiles
    # b_ref: (1, tn)      f32 bias (stripe)
    # o_ref: (tm, tn)     output tile (final concat layout after reshape)
    acc = jnp.dot(x_ref[...], w_ref[...], preferred_element_type=jnp.float32)
    o_ref[...] = (acc + b_ref[...]).astype(o_ref.dtype)


def _round_down(x, m):
    return (x // m) * m


def _round_up(x, m):
    return ((x + m - 1) // m) * m


def _vmem_limit_bytes():
    cap = 64 * 1024 * 1024  # conservative default = v7x per-TC VMEM
    try:
        info = pltpu.get_tpu_info()
        cap = int(getattr(info, "vmem_capacity_bytes", cap) or cap)
    except Exception:
        pass
    # ~85% of physical, capped at 100 MiB (comfortable on v5e/v6e 128 MiB,
    # ~54 MiB on v7x 64 MiB -- both above the default scoped limits).
    return min(int(cap * 0.85), 100 * 1024 * 1024)


def split_wrapper_forward(x, w, b, size):
    """x: [B, S, 2*size]; w: [size, hidden]; b: [hidden].

    Returns [B, S, 2*hidden] == cat([x[..., :size] @ w + b,
                                     x[..., size:] @ w + b], -1).
    """
    B, S, D = x.shape
    assert D == 2 * size, "input feature dim must be 2*size for this synthetic layer"
    K = size
    N = w.shape[1]
    M2 = 2 * B * S  # one matmul row per half-token (h1 and h2 interleaved)

    out_dtype = x.dtype
    in_bytes = 2  # bf16 x / w
    out_bytes = jnp.dtype(out_dtype).itemsize

    # Free row-major reshape: row 2t = h1 of token t, row 2t+1 = h2 of token t.
    x2d = x.reshape(M2, K).astype(jnp.bfloat16)
    w_bf = w.astype(jnp.bfloat16)
    b2d = b.reshape(1, N).astype(jnp.float32)

    vmem_limit = _vmem_limit_bytes()

    # --- N tiling: keep only a weight stripe resident if the full weight is big.
    if K * N * in_bytes <= vmem_limit // 4:
        tn, grid_n = N, 1
    else:
        tn = _round_down(max(128, (vmem_limit // 8) // (K * in_bytes)), 128)
        tn = max(128, min(tn, _round_up(N, 128)))
        grid_n = pl.cdiv(N, tn)
    # NOTE: for very small hidden (< 128 lanes, like the toy case) the output
    # stores are lane-masked; pad N to 128 in production if store-bound.

    # --- Row-tile budget from VMEM:
    #   resident: weight stripe (+bias), single-buffered when its index is constant;
    #   per row : double-buffered x tile + double-buffered output tile.
    wbuf = 1 if grid_n == 1 else 2
    resident = wbuf * K * tn * in_bytes + 2 * tn * 4
    per_row = 2 * (K * in_bytes + tn * out_bytes)
    headroom = 2 * 1024 * 1024
    tm_budget = max(8, (vmem_limit - resident - headroom) // per_row)

    if M2 <= 512:
        # Tiny inputs: one full-extent row tile; per-step grid overhead
        # (~0.35 us) would dominate any pipelining benefit.
        tm = M2
    else:
        # >= 8 row tiles so v7x's second TensorCore participates, 256-row
        # multiples for the 2x256x256 MXU cadence, capped by the VMEM budget.
        tm_target = _round_up(pl.cdiv(M2, 8), 256)
        tm = min(tm_budget, tm_target, M2)
        tm = max(256, _round_down(tm, 256))
        tm = min(tm, M2)
    grid_m = pl.cdiv(M2, tm)

    if grid_n == 1:
        # Constant index map -> DMA'd once; single-buffer to halve VMEM footprint.
        w_spec = pl.BlockSpec((K, tn), lambda i, j: (0, j),
                              pipeline_mode=pl.Buffered(1))
        b_spec = pl.BlockSpec((1, tn), lambda i, j: (0, j),
                              pipeline_mode=pl.Buffered(1))
    else:
        w_spec = pl.BlockSpec((K, tn), lambda i, j: (0, j))
        b_spec = pl.BlockSpec((1, tn), lambda i, j: (0, j))

    cost = pl.CostEstimate(
        flops=2 * M2 * K * N,
        transcendentals=0,
        bytes_accessed=(M2 * K * in_bytes + K * N * in_bytes
                        + N * 4 + M2 * N * out_bytes),
    )

    out2d = pl.pallas_call(
        _split_linear_kernel,
        out_shape=jax.ShapeDtypeStruct((M2, N), out_dtype),
        grid_spec=pltpu.PrefetchScalarGridSpec(
            num_scalar_prefetch=0,
            grid=(grid_m, grid_n),
            in_specs=[
                pl.BlockSpec((tm, K), lambda i, j: (i, 0)),
                w_spec,
                b_spec,
            ],
            out_specs=pl.BlockSpec((tm, tn), lambda i, j: (i, j)),
        ),
        compiler_params=pltpu.CompilerParams(
            dimension_semantics=("parallel", "parallel"),
            vmem_limit_bytes=int(vmem_limit),
        ),
        cost_estimate=cost,
    )(x2d, w_bf, b2d)

    # This reshape IS the concat: rows (2t, 2t+1) -> [layer(h1)_t | layer(h2)_t].
    return out2d.reshape(B, S, 2 * N)


if __name__ == "__main__":
    # small shapes consistent with the module: x is [B, S, 2*size]
    B, S, size, hidden = 2, 8, 16, 32

    key = jax.random.PRNGKey(0)
    kx, kw, kb = jax.random.split(key, 3)
    x = jax.random.normal(kx, (B, S, 2 * size), dtype=jnp.float32)
    # deterministic synthetic Linear(size -> hidden) parameters
    w = jax.random.normal(kw, (size, hidden), dtype=jnp.float32) * 0.1
    b = jax.random.normal(kb, (hidden,), dtype=jnp.float32) * 0.1

    y = split_wrapper_forward(x, w, b, size)
    y = jax.block_until_ready(y)

    # reference: split, apply linear, concat -- computed with the same bf16
    # input/weight cast (f32 accumulate) that the kernel uses on the MXU.
    xc = x.astype(jnp.bfloat16)
    wc = w.astype(jnp.bfloat16)
    h1, h2 = xc[:, :, :size], xc[:, :, size:]
    r1 = jnp.dot(h1, wc, preferred_element_type=jnp.float32) + b
    r2 = jnp.dot(h2, wc, preferred_element_type=jnp.float32) + b
    ref = jnp.concatenate([r1, r2], axis=-1).astype(x.dtype)

    assert y.shape == (B, S, 2 * hidden)
    assert jnp.allclose(y, ref, atol=2e-3, rtol=2e-3), "mismatch vs reference"

    print("KERNEL_OK")
</pallas_src>

<mosaic_0001>
module attributes {stable_mosaic.version = 11 : i64} {
  func.func @_split_linear_kernel(%arg0: i32, %arg1: i32, %arg2: memref<32x16xbf16, #tpu.memory_space<vmem>>, %arg3: memref<16x32xbf16, #tpu.memory_space<vmem>>, %arg4: memref<1x32xf32, #tpu.memory_space<vmem>>, %arg5: memref<32x32xf32, #tpu.memory_space<vmem>>) attributes {dimension_semantics = [#tpu.dimension_semantics<parallel>, #tpu.dimension_semantics<parallel>], iteration_bounds = array<i64: 1, 1>, scalar_prefetch = 0 : i64, scratch_operands = 0 : i64, tpu.core_type = #tpu.core_type<tc>, window_params = [{transform_indices = @transform_0, window_bounds = array<i64: 32, 16>}, {pipeline_mode = #tpu.pipeline_mode<synchronous>, transform_indices = @transform_1, window_bounds = array<i64: 16, 32>}, {pipeline_mode = #tpu.pipeline_mode<synchronous>, transform_indices = @transform_2, window_bounds = array<i64: 1, 32>}, {transform_indices = @transform_3, window_bounds = array<i64: 32, 32>}]} {
    %c0 = arith.constant 0 : index
    %c0_0 = arith.constant 0 : index
    %0 = vector.load %arg2[%c0, %c0_0] : memref<32x16xbf16, #tpu.memory_space<vmem>>, vector<32x16xbf16>
    %c0_1 = arith.constant 0 : index
    %c0_2 = arith.constant 0 : index
    %1 = vector.load %arg3[%c0_1, %c0_2] : memref<16x32xbf16, #tpu.memory_space<vmem>>, vector<16x32xbf16>
    %cst = arith.constant dense<0.000000e+00> : vector<32x32xf32>
    %2 = tpu.matmul %0, %1, %cst {dimension_numbers = #tpu.dot_dimension_numbers<[1], [0], [0], [1], [0, 0, 1, 1], [], []>} : vector<32x16xbf16>, vector<16x32xbf16>, vector<32x32xf32> -> vector<32x32xf32>
    %c0_3 = arith.constant 0 : index
    %c0_4 = arith.constant 0 : index
    %3 = vector.load %arg4[%c0_3, %c0_4] : memref<1x32xf32, #tpu.memory_space<vmem>>, vector<1x32xf32>
    %4 = vector.broadcast %3 : vector<1x32xf32> to vector<32x32xf32>
    %5 = arith.addf %2, %4 : vector<32x32xf32>
    %c0_5 = arith.constant 0 : index
    %c0_6 = arith.constant 0 : index
    %6 = vector.load %arg5[%c0_5, %c0_6] : memref<32x32xf32, #tpu.memory_space<vmem>>, vector<32x32xf32>
    tpu.vector_store %arg5[%c0_5, %c0_6], %5 {strides = array<i32>} : memref<32x32xf32, #tpu.memory_space<vmem>>, vector<32x32xf32>,
    return
  }
  func.func @transform_0(%arg0: i32, %arg1: i32) -> (i32, i32) {
    %c0_i32 = arith.constant 0 : i32
    %c0_i32_0 = arith.constant 0 : i32
    return %arg0, %c0_i32 : i32, i32
  }
  func.func @transform_1(%arg0: i32, %arg1: i32) -> (i32, i32) {
    %c0_i32 = arith.constant 0 : i32
    %c0_i32_0 = arith.constant 0 : i32
    return %c0_i32, %arg1 : i32, i32
  }
  func.func @transform_2(%arg0: i32, %arg1: i32) -> (i32, i32) {
    %c0_i32 = arith.constant 0 : i32
    %c0_i32_0 = arith.constant 0 : i32
    return %c0_i32, %arg1 : i32, i32
  }
  func.func @transform_3(%arg0: i32, %arg1: i32) -> (i32, i32) {
    %c0_i32 = arith.constant 0 : i32
    return %arg0, %arg1 : i32, i32
  }
}

</mosaic_0001>

<bundles_post_ra>
// kernel: tpu_custom_call.1
= control target key start
LH: loop header
LB: loop body
LE: loop exit
PB: predicated region body
PF: predicated region fallthrough
CT: control target
= control target key end

     0   :  { %vm45_vm0 = vcmask 130048   ;;  %s214_s0 = inlined_call_operand.vmem [shape: bf16[32,16], index: 0, kind: input, shape index: {}]   ;;  %s215_s1 = inlined_call_operand.vmem [shape: bf16[16,32], index: 1, kind: input, shape index: {}]   ;;  %s216_s2 = inlined_call_operand.vmem [shape: f32[1,32], index: 2, kind: input, shape index: {}]   ;;  %s217_s3 = inlined_call_operand.hbm [shape: f32[32,32], index: 3, kind: output, shape index: {}]  }
   0x1   :  { %v140_v0 = vld [vmem:[%s215_s1] sm:$0xff]   ;;  %v142_v2 = vld [vmem:[%s214_s0 + $0x8] sm:$0xff]  }
   0x2   :  { %v141_v1 = vld [vmem:[%s214_s0] sm:$0xff]   ;;  %131 = vmatprep.subr.bf16.mxu0 %v140_v0 }
   0x3   :  { %132 = vmatpush3.bf16.msra.mxu0 %v140_v0  ;;  %133 = vmatprep.mubr.msk.bf16.mxu0 %vm45_vm0, %v141_v1 }
   0x4   :  { %8 = vsyncpa [#allocation3], 0  ;;  %v122_v3 = vld [vmem:[%s216_s2] ss:$0 sm:$0xff]  ;;  %vm101_vm1 = vcmask 261120   ;;  %s167_s1 = smov [#allocation2]  }
   0x5   :  { %s111_s20 = sshll.u32 %s167_s1, 4  ;;  %s112_s20 = int_to_ptr.vmem [resolvable:$true] %s111_s20 }
   0x6   :  { %134 = vmatmul.mubr.msk.bf16.vlgmr.msra.gmra.mrb[0].mxu0 %vm45_vm0, %v142_v2  ;;  %s143_s0 = scalar_lea.vmem %s112_s20, 512  ;;  %p148_p1 = scmp.lt.s32.totalorder %s112_s20, %s112_s20 }
   0x7   :  { %p144_p0 = scmp.ne.s32.totalorder %s112_s20, %s143_s0  ;;  %p149_p2 = scmp.lt.s32.totalorder %s143_s0, %s143_s0 }
   0x9   :  { %p150_p3 = por %p149_p2, %p148_p1 }
   0xb   :  { %p151_p4 = pnand %p150_p3, %p144_p0 }
  0xd9   :  { %v135_v4 = vpop.f32.mrb[0].mxu0 }
  0xda   :  { %v95_v5 = vadd.f32 %v135_v4, %v122_v3  ;;  %v86_v6 = vpop.f32.mrb[1].mxu0 }
  0xdb   :  { %v87_v7 = vadd.f32 %v122_v3, %v86_v6  ;;  %v136_v8 = vpop.f32.mrb[2].mxu0 }
  0xdc   :  { %104 = vst.msk [vmem:[#allocation2 + $0x10] sm:$0xff] %vm101_vm1, %v95_v5  ;;  %v98_v9 = vadd.f32 %v136_v8, %v122_v3  ;;  %v89_v10 = vpop.f32.mrb[3].mxu0 }
  0xdd   :  { %102 = vst.msk [vmem:[#allocation2] sm:$0xff] %vm101_vm1, %v87_v7  ;;  %v90_v11 = vadd.f32 %v122_v3, %v89_v10 }
  0xde   :  { %105 = vst.msk [vmem:[#allocation2 + $0x18] sm:$0xff] %vm101_vm1, %v98_v9 }
  0xdf   :  { %103 = vst.msk [vmem:[#allocation2 + $0x8] sm:$0xff] %vm101_vm1, %v90_v11 }
  0xe0   :  { %154 = shalt.err (!%p151_p4)
}
  0xe1   :  { %s155_s22 = scalar_lea.hbm %s217_s3, 512 }
  0xe2   :  { %p156_p5 = scmp.ne.s32.totalorder %s217_s3, %s155_s22  ;;  %p159_p6 = scmp.lt.u32.totalorder %s155_s22, %s217_s3 }
  0xe4   :  { %p161_p7 = pnand %p159_p6, %p156_p5 }
  0xe6   :  { %164 = shalt.err (!%p161_p7)
}
  0xe7   :  { %s168_s27 = smov 128   ;;  %s169_s28 = smov 8  }
  0xe8   :  { %117 = dma.vmem_to_hbm [thread:$0]  %s112_s20, 512, %s217_s3, [#allocation3], %s168_s27, %s168_s27, %s169_s28  }
  0xe9   :  { %165 = dma.done.wait [#allocation3], 512  }
  0xea   :  { %166 = vsyncadd [#allocation3], 4294966784 }
  0xeb   :  { %121 = vsyncpa [#allocation3], 1 }

</bundles_post_ra>
